<compile_context>
chip_gen: v6e
topology: v6e:2x2x1
jax: 0.10.0
libtpu: 0.0.40
codegen_flags: <defaults>
</compile_context>

<pallas_src>
import math

import jax
import jax.numpy as jnp
from jax.experimental import pallas as pl
from jax.experimental.pallas import tpu as pltpu


def _round_up(x, m):
    return ((x + m - 1) // m) * m


def _pick_row_tile(rows, row_bytes, target_block_bytes=2 << 20, min_steps=4):
    """~2 MiB blocks (measured HBM-roofline sweet spot), multiples of 8 sublanes,
    and >= min_steps grid steps when there is enough work so the v7x megacore split
    still leaves >=2 blocks per TensorCore (keeps per-core DMA double-buffering)."""
    if rows <= 8:
        return rows                                   # single full-extent block
    by_bytes = max(8, ((target_block_bytes // max(row_bytes, 1)) // 8) * 8)
    by_steps = max(8, _round_up(pl.cdiv(rows, min_steps), 8))
    return min(by_bytes, by_steps, _round_up(rows, 8))


def _pose_coef_rows(w, b, d, width):
    """Per-lane coefficient rows for the packed layout (width = lcm(d, 128)).
    Row 0: self weight (w00 / w11 / 0), row 1: partner weight (w01 / w10 / 0),
    row 2: bias (b0 / b1 / 0), row 3: lane kind (+1 feat-0, -1 feat-1, 0 pass)."""
    w = w.astype(jnp.float32)
    b = b.astype(jnp.float32)
    lane = jnp.arange(width, dtype=jnp.int32)
    col = lane % d
    is0 = col == 0
    is1 = col == 1
    cs = jnp.where(is0, w[0, 0], jnp.where(is1, w[1, 1], 0.0))
    cp = jnp.where(is0, w[0, 1], jnp.where(is1, w[1, 0], 0.0))
    cb = jnp.where(is0, b[0], jnp.where(is1, b[1], 0.0))
    sel = jnp.where(is0, 1.0, jnp.where(is1, -1.0, 0.0))
    return jnp.stack([cs, cp, cb, sel], axis=0).astype(jnp.float32)   # (4, width)


def _lane_dense_kernel(coef_ref, x_ref, o_ref):
    """x_ref: (TR, L); every consecutive group of D lanes is one pose row (D is baked
    into the coefficient rows). Lanes with lane % D in {0, 1} get the 2x2 affine,
    all other lanes pass the original bits through."""
    x = x_ref[...]                                   # (TR, L), original dtype
    xf = x.astype(jnp.float32)                       # f32 accumulate like nn.Linear
    width = x.shape[-1]

    cs = coef_ref[0:1, :]                            # (1, L) rows broadcast over TR
    cp = coef_ref[1:2, :]
    cb = coef_ref[2:3, :]
    sel = coef_ref[3:4, :]

    # pltpu.roll follows jnp.roll: roll(x, 1)[i] == x[i-1].
    left = pltpu.roll(xf, 1, axis=1)                 # lane i-1 (x0 for feat-1 lanes)
    right = pltpu.roll(xf, width - 1, axis=1)        # lane i+1 (x1 for feat-0 lanes)
    partner = jnp.where(sel > 0.0, right, left)      # the other translation feature

    y = (xf * cs + partner * cp + cb).astype(x.dtype)
    o_ref[...] = jnp.where(sel != 0.0, y, x)         # exact passthrough elsewhere


def _rowmajor_kernel(params_ref, x_ref, o_ref):
    """Slow fallback (masked, D-wide stores): x_ref is (TB, D); columns 0/1 get the
    2x2 affine, the rest pass through. Only used for tiny ragged shapes where padding
    into the lane-dense layout would waste more than it saves."""
    x = x_ref[...]
    xf = x.astype(jnp.float32)

    w00 = params_ref[0]
    w01 = params_ref[1]
    w10 = params_ref[2]
    w11 = params_ref[3]
    b0 = params_ref[4]
    b1 = params_ref[5]

    x0 = xf[:, 0:1]
    x1 = xf[:, 1:2]
    dt0 = x0 * w00 + x1 * w01 + b0
    dt1 = x0 * w10 + x1 * w11 + b1

    col = jax.lax.broadcasted_iota(jnp.int32, x.shape, 1)
    den = jnp.where(col == 0, dt0, dt1).astype(x.dtype)
    o_ref[...] = jnp.where(col < 2, den, x)


def trivial_pose_denoiser(x, w, b, *, target_block_bytes=2 << 20):
    """TrivialPoseDenoiser.forward: cat([Linear(2,2)(x[:, :2]), x[:, 2:]], dim=1).

    x: (B, D) with D >= 2; w: (2, 2); b: (2,). Returns (B, D) in x.dtype.
    """
    B, D = x.shape
    assert D >= 2, "pose must have at least 2 translation dims"
    dtype = x.dtype
    itemsize = jnp.dtype(dtype).itemsize

    cost = pl.CostEstimate(
        flops=8 * B,
        transcendentals=0,
        bytes_accessed=2 * B * D * itemsize,
    )
    cparams = pltpu.CompilerParams(dimension_semantics=("parallel",))

    L = (D * 128) // math.gcd(D, 128)        # lcm(D, 128): packed lane-row width
    group = L // D                           # pose rows per packed lane-row
    pad = (-B) % group
    # Lane-dense path whenever the reshape is exact (zero copy) or the tail padding
    # is a modest fraction of the work; masked narrow-store fallback otherwise.
    use_packed = (pad == 0) or (B >= 2 * group)

    if use_packed:
        xb = x if pad == 0 else jnp.pad(x, ((0, pad), (0, 0)))
        rows = ((B + pad) * D) // L
        x_packed = xb.reshape(rows, L)       # row-major relayout, no data reorder
        coef = _pose_coef_rows(w, b, D, L)   # tiny resident VMEM block
        tile_r = _pick_row_tile(rows, L * itemsize, target_block_bytes)
        out = pl.pallas_call(
            _lane_dense_kernel,
            out_shape=jax.ShapeDtypeStruct((rows, L), dtype),
            grid_spec=pltpu.PrefetchScalarGridSpec(
                num_scalar_prefetch=0,
                grid=(pl.cdiv(rows, tile_r),),
                in_specs=[
                    pl.BlockSpec((4, L), lambda i: (0, 0)),         # resident coef
                    pl.BlockSpec((tile_r, L), lambda i: (i, 0)),    # packed x
                ],
                out_specs=pl.BlockSpec((tile_r, L), lambda i: (i, 0)),
            ),
            compiler_params=cparams,
            cost_estimate=cost,
        )(coef, x_packed)
        out = out.reshape(B + pad, D)
        return out if pad == 0 else out[:B]

    # Tiny ragged fallback: six f32 scalars in SMEM, (tile_b, D) blocks.
    params = jnp.concatenate(
        [w.astype(jnp.float32).reshape(-1), b.astype(jnp.float32).reshape(-1)]
    )
    tile_b = _pick_row_tile(B, D * itemsize, target_block_bytes)
    return pl.pallas_call(
        _rowmajor_kernel,
        out_shape=jax.ShapeDtypeStruct((B, D), dtype),
        grid_spec=pltpu.PrefetchScalarGridSpec(
            num_scalar_prefetch=0,
            grid=(pl.cdiv(B, tile_b),),
            in_specs=[
                pl.BlockSpec(memory_space=pltpu.MemorySpace.SMEM),
                pl.BlockSpec((tile_b, D), lambda i: (i, 0)),
            ],
            out_specs=pl.BlockSpec((tile_b, D), lambda i: (i, 0)),
        ),
        compiler_params=cparams,
        cost_estimate=cost,
    )(params, x)


if __name__ == "__main__":
    key = jax.random.PRNGKey(0)
    kx1, kw, kb, kx2, kx3 = jax.random.split(key, 5)

    # nn.Linear(2, 2) parameters: W (2, 2), b (2,)
    bound = 1.0 / jnp.sqrt(2.0)
    w = jax.random.uniform(kw, (2, 2), jnp.float32, minval=-bound, maxval=bound)
    b = jax.random.uniform(kb, (2,), jnp.float32, minval=-bound, maxval=bound)

    def ref_fn(x):
        return jnp.concatenate([x[:, :2] @ w.T + b, x[:, 2:]], axis=1)

    # 1) Zero-copy lane-dense path: pose = (tx, ty, cos(theta), sin(theta)).
    x1 = jax.random.normal(kx1, (256, 4), dtype=jnp.float32)
    o1 = jax.block_until_ready(trivial_pose_denoiser(x1, w, b))
    assert o1.shape == x1.shape
    assert jnp.allclose(o1, ref_fn(x1), atol=1e-5, rtol=1e-5), "packed path mismatch"

    # 2) Lane-dense path with tail padding: D = 3 (lcm(3,128) = 384-lane rows).
    x2 = jax.random.normal(kx2, (300, 3), dtype=jnp.float32)
    o2 = jax.block_until_ready(trivial_pose_denoiser(x2, w, b))
    assert o2.shape == x2.shape
    assert jnp.allclose(o2, ref_fn(x2), atol=1e-5, rtol=1e-5), "padded path mismatch"

    # 3) Tiny ragged fallback (row-major, masked stores — slow path by design).
    x3 = jax.random.normal(kx3, (10, 5), dtype=jnp.float32)
    o3 = jax.block_until_ready(trivial_pose_denoiser(x3, w, b))
    assert o3.shape == x3.shape
    assert jnp.allclose(o3, ref_fn(x3), atol=1e-5, rtol=1e-5), "fallback path mismatch"

    print("KERNEL_OK")
</pallas_src>

<mosaic_0001>
module attributes {stable_mosaic.version = 11 : i64} {
  func.func @_lane_dense_kernel(%arg0: i32, %arg1: memref<4x128xf32, #tpu.memory_space<vmem>>, %arg2: memref<8x128xf32, #tpu.memory_space<vmem>>, %arg3: memref<8x128xf32, #tpu.memory_space<vmem>>) attributes {dimension_semantics = [#tpu.dimension_semantics<parallel>], iteration_bounds = array<i64: 1>, scalar_prefetch = 0 : i64, scratch_operands = 0 : i64, tpu.core_type = #tpu.core_type<tc>, window_params = [{pipeline_mode = #tpu.pipeline_mode<synchronous>, transform_indices = @transform_0, window_bounds = array<i64: 4, 128>}, {transform_indices = @transform_1, window_bounds = array<i64: 8, 128>}, {transform_indices = @transform_2, window_bounds = array<i64: 8, 128>}]} {
    %c0 = arith.constant 0 : index
    %c0_0 = arith.constant 0 : index
    %0 = vector.load %arg2[%c0, %c0_0] : memref<8x128xf32, #tpu.memory_space<vmem>>, vector<8x128xf32>
    %c0_1 = arith.constant 0 : index
    %c0_2 = arith.constant 0 : index
    %1 = vector.load %arg1[%c0_1, %c0_2] : memref<4x128xf32, #tpu.memory_space<vmem>>, vector<1x128xf32>
    %c1 = arith.constant 1 : index
    %c0_3 = arith.constant 0 : index
    %2 = vector.load %arg1[%c1, %c0_3] : memref<4x128xf32, #tpu.memory_space<vmem>>, vector<1x128xf32>
    %c2 = arith.constant 2 : index
    %c0_4 = arith.constant 0 : index
    %3 = vector.load %arg1[%c2, %c0_4] : memref<4x128xf32, #tpu.memory_space<vmem>>, vector<1x128xf32>
    %c3 = arith.constant 3 : index
    %c0_5 = arith.constant 0 : index
    %4 = vector.load %arg1[%c3, %c0_5] : memref<4x128xf32, #tpu.memory_space<vmem>>, vector<1x128xf32>
    %c1_i32 = arith.constant 1 : i32
    %5 = tpu.dynamic_rotate %0 by %c1_i32 dim 1 : vector<8x128xf32>, i32 -> vector<8x128xf32>
    %c127_i32 = arith.constant 127 : i32
    %6 = tpu.dynamic_rotate %0 by %c127_i32 dim 1 : vector<8x128xf32>, i32 -> vector<8x128xf32>
    %cst = arith.constant 0.000000e+00 : f32
    %7 = vector.broadcast %cst : f32 to vector<1x128xf32>
    %8 = arith.cmpf ogt, %4, %7 : vector<1x128xf32>
    %9 = vector.shape_cast %8 : vector<1x128xi1> to vector<1x128xi1>
    %10 = vector.broadcast %9 : vector<1x128xi1> to vector<8x128xi1>
    %11 = arith.select %10, %6, %5 : vector<8x128xi1>, vector<8x128xf32>
    %12 = vector.broadcast %1 : vector<1x128xf32> to vector<8x128xf32>
    %13 = arith.mulf %0, %12 : vector<8x128xf32>
    %14 = vector.broadcast %2 : vector<1x128xf32> to vector<8x128xf32>
    %15 = arith.mulf %11, %14 : vector<8x128xf32>
    %16 = arith.addf %13, %15 : vector<8x128xf32>
    %17 = vector.broadcast %3 : vector<1x128xf32> to vector<8x128xf32>
    %18 = arith.addf %16, %17 : vector<8x128xf32>
    %cst_6 = arith.constant 0.000000e+00 : f32
    %19 = vector.broadcast %cst_6 : f32 to vector<1x128xf32>
    %20 = arith.cmpf one, %4, %19 : vector<1x128xf32>
    %21 = vector.shape_cast %20 : vector<1x128xi1> to vector<1x128xi1>
    %22 = vector.broadcast %21 : vector<1x128xi1> to vector<8x128xi1>
    %23 = arith.select %22, %18, %0 : vector<8x128xi1>, vector<8x128xf32>
    %c0_7 = arith.constant 0 : index
    %c0_8 = arith.constant 0 : index
    %24 = vector.load %arg3[%c0_7, %c0_8] : memref<8x128xf32, #tpu.memory_space<vmem>>, vector<8x128xf32>
    tpu.vector_store %arg3[%c0_7, %c0_8], %23 {strides = array<i32>} : memref<8x128xf32, #tpu.memory_space<vmem>>, vector<8x128xf32>,
    return
  }
  func.func @transform_0(%arg0: i32) -> (i32, i32) {
    %c0_i32 = arith.constant 0 : i32
    %c0_i32_0 = arith.constant 0 : i32
    %c0_i32_1 = arith.constant 0 : i32
    return %c0_i32, %c0_i32_0 : i32, i32
  }
  func.func @transform_1(%arg0: i32) -> (i32, i32) {
    %c0_i32 = arith.constant 0 : i32
    %c0_i32_0 = arith.constant 0 : i32
    return %arg0, %c0_i32 : i32, i32
  }
  func.func @transform_2(%arg0: i32) -> (i32, i32) {
    %c0_i32 = arith.constant 0 : i32
    %c0_i32_0 = arith.constant 0 : i32
    return %arg0, %c0_i32 : i32, i32
  }
}

</mosaic_0001>

<bundles_post_ra>
// kernel: tpu_custom_call.1
= control target key start
LH: loop header
LB: loop body
LE: loop exit
PB: predicated region body
PF: predicated region fallthrough
CT: control target
= control target key end

     0   :  { %7 = vsyncpa [#allocation3], 0  ;;  %s199_s0 = inlined_call_operand.hbm [shape: f32[4,128], index: 0, kind: input, shape index: {}]   ;;  %s200_s1 = inlined_call_operand.hbm [shape: f32[8,128], index: 1, kind: input, shape index: {}]   ;;  %s201_s2 = inlined_call_operand.hbm [shape: f32[8,128], index: 2, kind: output, shape index: {}]  }
   0x1   :  { %8 = vsyncpa [#allocation6], 0 }
   0x2   :  { %9 = vsyncpa [#allocation4], 0  ;;  %s169_s9 = smov [#allocation2]   ;;  %s170_s11 = smov [#allocation5]  }
   0x3   :  { %s16_s10 = sshll.u32 %s169_s9, 4  ;;  %s26_s12 = sshll.u32 %s170_s11, 4  ;;  %s17_s10 = int_to_ptr.vmem [resolvable:$true] %s16_s10  ;;  %s27_s12 = int_to_ptr.vmem [resolvable:$true] %s26_s12 }
   0x4   :  { %s111_s13 = scalar_lea.vmem %s17_s10, 64  ;;  %p116_p1 = scmp.lt.s32.totalorder %s17_s10, %s17_s10 }
   0x5   :  { %p112_p0 = scmp.ne.s32.totalorder %s17_s10, %s111_s13  ;;  %p117_p2 = scmp.lt.s32.totalorder %s111_s13, %s111_s13 }
   0x7   :  { %p118_p3 = por %p117_p2, %p116_p1 }
   0x9   :  { %p119_p4 = pnand %p118_p3, %p112_p0 }
   0xb   :  { %122 = shalt.err (!%p119_p4)
}
   0xc   :  { %19 = dma.hbm_to_vmem [thread:$0]  %s199_s0, 64, %s17_s10, [#allocation3]  }
   0xd   :  { %s131_s16 = scalar_lea.vmem %s27_s12, 128  ;;  %p136_p6 = scmp.lt.s32.totalorder %s27_s12, %s27_s12 }
   0xe   :  { %p132_p5 = scmp.ne.s32.totalorder %s27_s12, %s131_s16  ;;  %p137_p7 = scmp.lt.s32.totalorder %s131_s16, %s131_s16 }
  0x10   :  { %p138_p8 = por %p137_p7, %p136_p6 }
  0x12   :  { %p139_p9 = pnand %p138_p8, %p132_p5 }
  0x14   :  { %142 = shalt.err (!%p139_p9)
}
  0x15   :  { %29 = dma.hbm_to_vmem [thread:$0]  %s200_s1, 128, %s27_s12, [#allocation6]  }
  0x16   :  { %163 = dma.done.wait [#allocation3], 64  }
  0x17   :  { %164 = vsyncadd [#allocation3], 4294967232 }
  0x18   :  { %165 = dma.done.wait [#allocation6], 128  }
  0x19   :  { %166 = vsyncadd [#allocation6], 4294967168  ;;  %v36_v0 = vld [vmem:[#allocation5] sm:$0xff]  ;;  %s171_s19 = smov 1   ;;  %s172_s20 = smov 127   ;;  %v47_v1 = vlaneseq  ;;  %v173_v5 = vmov 0  }
  0x1a   :  { %41 = vrot.lane.b32.xlu0 %v36_v0, %s171_s19  ;;  %v40_v2 = vld [vmem:[#allocation2 + $0x3] sm:$0x1]  ;;  %v94_v9 = vld [vmem:[#allocation2] ss:$0 sm:$0xff]  ;;  %v95_v11 = vld [vmem:[#allocation2 + $0x1] ss:$0 sm:$0xff] }
  0x1b   :  { %v48_v3 = vshrl.u32 %v47_v1, 7  ;;  %vm45_vm0 = vcmp.gt.f32.partialorder %v40_v2, 0.0  ;;  %vm69_vm1 = vcmp.ne.f32.partialorder %v40_v2, 0.0  ;;  %v57_v13 = vmul.f32 %v94_v9, %v36_v0  ;;  %v96_v17 = vld [vmem:[#allocation2 + $0x2] ss:$0 sm:$0xff]  ;;  %s174_s0 = smov [#allocation7]  }
  0x1c   :  { %v46_v6 = vsel %vm45_vm0, 1, %v173_v5  ;;  %v70_v10 = vsel %vm69_vm1, 1, %v173_v5  ;;  %s84_s1 = sshll.u32 %s174_s0, 4  ;;  %s85_s1 = int_to_ptr.vmem [resolvable:$true] %s84_s1 }
  0x1d   :  { %v49_v4 = vsub.s32 0, %v48_v3  ;;  %s143_s21 = scalar_lea.vmem %s85_s1, 128  ;;  %p148_p11 = scmp.lt.s32.totalorder %s85_s1, %s85_s1 }
  0x1e   :  { %43 = vrot.lane.b32.xlu0 %v36_v0, %s172_s20  ;;  %p144_p10 = scmp.ne.s32.totalorder %s85_s1, %s143_s21  ;;  %p149_p12 = scmp.lt.s32.totalorder %s143_s21, %s143_s21 }
  0x1f   :  { %v50_v7 = vrot.slane %v46_v6, %v49_v4  ;;  %v74_v15 = vrot.slane %v70_v10, %v49_v4 }
  0x20   :  { %p150_p13 = por %p149_p12, %p148_p11 }
  0x21   :  { %vm51_vm2 = vcmp.eq.s32.totalorder %v50_v7, 1  ;;  %vm75_vm3 = vcmp.eq.s32.totalorder %v74_v15, 1 }
  0x22   :  { %p151_p0 = pnand %p150_p13, %p144_p10 }
  0x8c   :  { %v42_v8 = vpop.permute.xlu0 %41 }
  0x90   :  { %v44_v12 = vpop.permute.xlu0 %43 }
  0x91   :  { %v52_v14 = vsel %vm51_vm2, %v44_v12, %v42_v8 }
  0x92   :  { %v62_v16 = vmul.f32 %v95_v11, %v52_v14 }
  0x94   :  { %v63_v18 = vadd.f32 %v62_v16, %v57_v13 }
  0x96   :  { %v68_v19 = vadd.f32 %v96_v17, %v63_v18 }
  0x98   :  { %v76_v20 = vsel %vm75_vm3, %v68_v19, %v36_v0 }
  0x99   :  { %77 = vst [vmem:[#allocation7] sm:$0xff] %v76_v20 }
  0x9a   :  { %154 = shalt.err (!%p151_p0)
}
  0x9b   :  { %87 = dma.vmem_to_hbm [thread:$0]  %s85_s1, 128, %s201_s2, [#allocation4]  }
  0x9c   :  { %167 = dma.done.wait [#allocation4], 128  }
  0x9d   :  { %168 = vsyncadd [#allocation4], 4294967168 }
  0x9e   :  { %91 = vsyncpa [#allocation3], 1 }
  0x9f   :  { %92 = vsyncpa [#allocation6], 1 }
  0xa0   :  { %93 = vsyncpa [#allocation4], 1 }

</bundles_post_ra>
